<compile_context>
chip_gen: v6e
topology: v6e:2x2x1
jax: 0.10.0
libtpu: 0.0.40
codegen_flags: <defaults>
</compile_context>

<pallas_src>
import functools

import jax
import jax.numpy as jnp
from jax.experimental import pallas as pl
from jax.experimental.pallas import tpu as pltpu

_LANES = 128


def _round_up(n, m):
    return ((n + m - 1) // m) * m


def _cdiv(a, b):
    return (a + b - 1) // b


# ----------------------------------------------------------------------------
# Pallas kernel: fused 3-layer MLP.
#   layer1: (TB, D) @ (D, H)   + b1, ReLU        (dropout1 == identity in eval)
#   layer2: (TB, H) @ (H, H2)  + b2, ReLU        (dropout2 == identity in eval)
#   head:   (1, H2) @ (H2, TB) + b3, sigmoid  -> (1, TB) lane-dense row
# ----------------------------------------------------------------------------
def _mlp_kernel(x_ref, w1_ref, b1_ref, w2_ref, b2_ref, w3_ref, b3_ref, o_ref):
    x = x_ref[...]                                               # (TB, D), compute dtype

    # layer1 + ReLU: MXU accumulates in f32, epilogue stays f32.
    h1 = jnp.dot(x, w1_ref[...], preferred_element_type=jnp.float32) + b1_ref[...]
    h1 = jnp.maximum(h1, 0.0)                                    # (TB, H) f32

    # layer2 + ReLU
    h2 = jnp.dot(h1.astype(w2_ref.dtype), w2_ref[...],
                 preferred_element_type=jnp.float32) + b2_ref[...]
    h2 = jnp.maximum(h2, 0.0)                                    # (TB, H2) f32

    # Output head, lane-dense: transpose h2 once (XLU, otherwise idle) and compute
    # (1, H2) @ (H2, TB) -> (1, TB).  The epilogue then runs on TB/128 vregs instead
    # of TB/8, and the store is an unmasked lane-dense vst.
    logits = jnp.dot(w3_ref[...], h2.T,
                     preferred_element_type=jnp.float32)         # (1, TB)
    logits = logits + b3_ref[0, 0]                               # scalar bias from SMEM

    # Sigmoid: exp on the EUP; exact reciprocal so results match jax.nn.sigmoid.
    o_ref[...] = pl.reciprocal(1.0 + jnp.exp(-logits), approx=False)


# ----------------------------------------------------------------------------
# Wrapper
# ----------------------------------------------------------------------------
@functools.partial(jax.jit,
                   static_argnames=("tile_b", "min_grid_steps", "compute_dtype"))
def deep_nn_forward(x, params, *, tile_b=2048, min_grid_steps=1,
                    compute_dtype=jnp.float32):
    """Forward pass of DeepNeuralNetwork via a fused Pallas kernel.

    x: (batch, input_size) float32 (features zero-padded / truncated to the layer1
       fan-in if they mismatch, mirroring the PyTorch module's forward()).
    params: dict with
        w1 (D, H)  f32, b1 (1, H)  f32
        w2 (H, H2) f32, b2 (1, H2) f32
        w3 (1, H2) f32 (head weight as a row), b3 (1, 1) f32
    tile_b: max batch-tile rows (rounded to 128); 2048-4096 recommended for big batches.
    min_grid_steps: set to 2 on v7x (2 TensorCores/chip) so the "parallel" grid axis
        has work for both cores; 1 on v5e/v6e.
    compute_dtype: jnp.float32 (exact) or jnp.bfloat16 (halves x/weight HBM streams;
        MXU still accumulates f32, epilogue stays f32).
    returns: (batch, 1) float32 probabilities in [0, 1].
    """
    w1 = params["w1"].astype(compute_dtype)
    b1 = params["b1"]
    w2 = params["w2"].astype(compute_dtype)
    b2 = params["b2"]
    w3 = params["w3"]                       # (1, H2) f32 head row
    b3 = params["b3"]                       # (1, 1)  f32 -> SMEM scalar

    d_in, hidden = w1.shape
    hidden2 = w2.shape[1]
    batch = x.shape[0]

    # Mirror the module's input-dimension fixup (zero-pad / truncate features).
    if x.shape[1] != d_in:
        m = min(d_in, x.shape[1])
        x = jnp.zeros((batch, d_in), x.dtype).at[:, :m].set(x[:, :m])

    # Cast x BEFORE the pallas_call so the bf16 path halves the dominant HBM stream.
    if x.dtype != compute_dtype:
        x = x.astype(compute_dtype)

    # Batch tiling: large tiles amortize the ~0.35us per-grid-step overhead; the tail
    # is balanced (tb from cdiv(batch, steps), so <128 pad rows per tile); tb is a
    # multiple of 128 so the (1, TB) output block is lane-dense.
    n_steps = max(min_grid_steps, _cdiv(batch, tile_b))
    tb = max(_LANES, _round_up(_cdiv(batch, n_steps), _LANES))
    grid_steps = _cdiv(batch, tb)
    b_pad = grid_steps * tb
    if b_pad != batch:
        x = jnp.pad(x, ((0, b_pad - batch), (0, 0)))

    out = pl.pallas_call(
        _mlp_kernel,
        out_shape=jax.ShapeDtypeStruct((1, b_pad), jnp.float32),
        grid_spec=pltpu.PrefetchScalarGridSpec(
            num_scalar_prefetch=0,
            grid=(grid_steps,),
            in_specs=[
                pl.BlockSpec((tb, d_in), lambda i: (i, 0)),          # x tile
                pl.BlockSpec((d_in, hidden), lambda i: (0, 0)),      # w1 (resident)
                pl.BlockSpec((1, hidden), lambda i: (0, 0)),         # b1
                pl.BlockSpec((hidden, hidden2), lambda i: (0, 0)),   # w2 (resident)
                pl.BlockSpec((1, hidden2), lambda i: (0, 0)),        # b2
                pl.BlockSpec((1, hidden2), lambda i: (0, 0)),        # w3 head row
                pl.BlockSpec(memory_space=pltpu.SMEM),               # b3 scalar
            ],
            out_specs=pl.BlockSpec((1, tb), lambda i: (0, i)),       # lane-dense row
        ),
        compiler_params=pltpu.CompilerParams(
            dimension_semantics=("parallel",)),
    )(x, w1, b1, w2, b2, w3, b3)

    return out[0, :batch, None]


# ----------------------------------------------------------------------------
# Deterministic parameter init (mirrors nn.Linear's uniform(-1/sqrt(in), +1/sqrt(in)))
# ----------------------------------------------------------------------------
def init_params(key, input_size, hidden_size=128):
    hidden2 = hidden_size // 2
    k = jax.random.split(key, 6)

    def lin(kw, kb, fan_in, fan_out):
        bound = 1.0 / jnp.sqrt(fan_in)
        w = jax.random.uniform(kw, (fan_in, fan_out), jnp.float32, -bound, bound)
        b = jax.random.uniform(kb, (1, fan_out), jnp.float32, -bound, bound)
        return w, b

    w1, b1 = lin(k[0], k[1], input_size, hidden_size)
    w2, b2 = lin(k[2], k[3], hidden_size, hidden2)
    w3, b3 = lin(k[4], k[5], hidden2, 1)

    return {
        "w1": w1, "b1": b1,
        "w2": w2, "b2": b2,
        "w3": w3.T, "b3": b3,   # head weight stored as a (1, H2) row
    }


def reference_forward(x, params):
    h1 = jnp.maximum(x @ params["w1"] + params["b1"], 0.0)
    h2 = jnp.maximum(h1 @ params["w2"] + params["b2"], 0.0)
    logits = jnp.sum(h2 * params["w3"], axis=-1, keepdims=True) + params["b3"]
    return jax.nn.sigmoid(logits)


if __name__ == "__main__":
    key = jax.random.PRNGKey(0)
    kx, kp, kx2 = jax.random.split(key, 3)

    input_size, hidden = 32, 128
    params = init_params(kp, input_size, hidden)

    # Small-batch smoke test (single grid step, tb padded to 128).
    x = jax.random.normal(kx, (2, input_size), jnp.float32)
    out = jax.block_until_ready(deep_nn_forward(x, params))
    ref = reference_forward(x, params)
    assert out.shape == (2, 1), out.shape
    assert jnp.allclose(out, ref, atol=2e-3, rtol=2e-3), (out, ref)

    # Multi-step grid with a balanced tail (300 rows -> 3 tiles of 128, 84 pad rows total).
    x2 = jax.random.normal(kx2, (300, input_size), jnp.float32)
    out2 = jax.block_until_ready(
        deep_nn_forward(x2, params, tile_b=128, min_grid_steps=2))
    ref2 = reference_forward(x2, params)
    assert out2.shape == (300, 1), out2.shape
    assert jnp.allclose(out2, ref2, atol=2e-3, rtol=2e-3)

    # bf16 activation/weight path (v5e/v6e/v7x tuning) with f32 MXU accumulation.
    out_bf16 = jax.block_until_ready(
        deep_nn_forward(x2, params, compute_dtype=jnp.bfloat16))
    assert out_bf16.shape == (300, 1), out_bf16.shape
    assert jnp.allclose(out_bf16, ref2, atol=5e-2, rtol=5e-2)

    print("KERNEL_OK")
</pallas_src>

<mosaic_0001>
module attributes {stable_mosaic.version = 11 : i64} {
  func.func @_mlp_kernel(%arg0: i32, %arg1: memref<128x32xf32, #tpu.memory_space<vmem>>, %arg2: memref<32x128xf32, #tpu.memory_space<vmem>>, %arg3: memref<1x128xf32, #tpu.memory_space<vmem>>, %arg4: memref<128x64xf32, #tpu.memory_space<vmem>>, %arg5: memref<1x64xf32, #tpu.memory_space<vmem>>, %arg6: memref<1x64xf32, #tpu.memory_space<vmem>>, %arg7: memref<1x1xf32, #tpu.memory_space<smem>>, %arg8: memref<1x128xf32, #tpu.memory_space<vmem>>) attributes {dimension_semantics = [#tpu.dimension_semantics<parallel>], iteration_bounds = array<i64: 1>, scalar_prefetch = 0 : i64, scratch_operands = 0 : i64, tpu.core_type = #tpu.core_type<tc>, window_params = [{transform_indices = @transform_0, window_bounds = array<i64: 128, 32>}, {pipeline_mode = #tpu.pipeline_mode<synchronous>, transform_indices = @transform_1, window_bounds = array<i64: 32, 128>}, {pipeline_mode = #tpu.pipeline_mode<synchronous>, transform_indices = @transform_2, window_bounds = array<i64: 1, 128>}, {pipeline_mode = #tpu.pipeline_mode<synchronous>, transform_indices = @transform_3, window_bounds = array<i64: 128, 64>}, {pipeline_mode = #tpu.pipeline_mode<synchronous>, transform_indices = @transform_4, window_bounds = array<i64: 1, 64>}, {pipeline_mode = #tpu.pipeline_mode<synchronous>, transform_indices = @transform_5, window_bounds = array<i64: 1, 64>}, {transform_indices = @transform_6, window_bounds = array<i64: 1, 1>}, {transform_indices = @transform_7, window_bounds = array<i64: 1, 128>}]} {
    %c0 = arith.constant 0 : index
    %c0_0 = arith.constant 0 : index
    %0 = vector.load %arg1[%c0, %c0_0] : memref<128x32xf32, #tpu.memory_space<vmem>>, vector<128x32xf32>
    %c0_1 = arith.constant 0 : index
    %c0_2 = arith.constant 0 : index
    %1 = vector.load %arg2[%c0_1, %c0_2] : memref<32x128xf32, #tpu.memory_space<vmem>>, vector<32x128xf32>
    %cst = arith.constant dense<0.000000e+00> : vector<128x128xf32>
    %2 = tpu.matmul %0, %1, %cst {dimension_numbers = #tpu.dot_dimension_numbers<[1], [0], [0], [1], [0, 0, 1, 1], [], []>} : vector<128x32xf32>, vector<32x128xf32>, vector<128x128xf32> -> vector<128x128xf32>
    %c0_3 = arith.constant 0 : index
    %c0_4 = arith.constant 0 : index
    %3 = vector.load %arg3[%c0_3, %c0_4] : memref<1x128xf32, #tpu.memory_space<vmem>>, vector<1x128xf32>
    %4 = vector.broadcast %3 : vector<1x128xf32> to vector<128x128xf32>
    %5 = arith.addf %2, %4 : vector<128x128xf32>
    %cst_5 = arith.constant 0.000000e+00 : f32
    %6 = vector.broadcast %cst_5 : f32 to vector<128x128xf32>
    %7 = arith.maximumf %5, %6 : vector<128x128xf32>
    %c0_6 = arith.constant 0 : index
    %c0_7 = arith.constant 0 : index
    %8 = vector.load %arg4[%c0_6, %c0_7] : memref<128x64xf32, #tpu.memory_space<vmem>>, vector<128x64xf32>
    %cst_8 = arith.constant dense<0.000000e+00> : vector<128x64xf32>
    %9 = tpu.matmul %7, %8, %cst_8 {dimension_numbers = #tpu.dot_dimension_numbers<[1], [0], [0], [1], [0, 0, 1, 1], [], []>} : vector<128x128xf32>, vector<128x64xf32>, vector<128x64xf32> -> vector<128x64xf32>
    %c0_9 = arith.constant 0 : index
    %c0_10 = arith.constant 0 : index
    %10 = vector.load %arg5[%c0_9, %c0_10] : memref<1x64xf32, #tpu.memory_space<vmem>>, vector<1x64xf32>
    %11 = vector.broadcast %10 : vector<1x64xf32> to vector<128x64xf32>
    %12 = arith.addf %9, %11 : vector<128x64xf32>
    %cst_11 = arith.constant 0.000000e+00 : f32
    %13 = vector.broadcast %cst_11 : f32 to vector<128x64xf32>
    %14 = arith.maximumf %12, %13 : vector<128x64xf32>
    %c0_12 = arith.constant 0 : index
    %c0_13 = arith.constant 0 : index
    %15 = vector.load %arg6[%c0_12, %c0_13] : memref<1x64xf32, #tpu.memory_space<vmem>>, vector<1x64xf32>
    %16 = tpu.transpose %14, [1, 0] : vector<128x64xf32> -> vector<64x128xf32>
    %cst_14 = arith.constant dense<0.000000e+00> : vector<1x128xf32>
    %17 = tpu.matmul %15, %16, %cst_14 {dimension_numbers = #tpu.dot_dimension_numbers<[1], [0], [0], [1], [0, 0, 1, 1], [], []>} : vector<1x64xf32>, vector<64x128xf32>, vector<1x128xf32> -> vector<1x128xf32>
    %c0_15 = arith.constant 0 : index
    %c0_16 = arith.constant 0 : index
    %18 = memref.load %arg7[%c0_15, %c0_16] : memref<1x1xf32, #tpu.memory_space<smem>>
    %19 = vector.broadcast %18 : f32 to vector<1x128xf32>
    %20 = arith.addf %17, %19 : vector<1x128xf32>
    %cst_17 = arith.constant 0.000000e+00 : f32
    %21 = vector.broadcast %cst_17 : f32 to vector<1x128xf32>
    %22 = arith.subf %21, %20 : vector<1x128xf32>
    %23 = math.exp %22 : vector<1x128xf32>
    %cst_18 = arith.constant 1.000000e+00 : f32
    %24 = vector.broadcast %cst_18 : f32 to vector<1x128xf32>
    %25 = arith.addf %24, %23 : vector<1x128xf32>
    %26 = tpu.reciprocal %25 : vector<1x128xf32> -> vector<1x128xf32>
    %c0_19 = arith.constant 0 : index
    %c0_20 = arith.constant 0 : index
    %27 = vector.load %arg8[%c0_19, %c0_20] : memref<1x128xf32, #tpu.memory_space<vmem>>, vector<1x128xf32>
    tpu.vector_store %arg8[%c0_19, %c0_20], %26 {strides = array<i32>} : memref<1x128xf32, #tpu.memory_space<vmem>>, vector<1x128xf32>,
    return
  }
  func.func @transform_0(%arg0: i32) -> (i32, i32) {
    %c0_i32 = arith.constant 0 : i32
    %c0_i32_0 = arith.constant 0 : i32
    return %arg0, %c0_i32 : i32, i32
  }
  func.func @transform_1(%arg0: i32) -> (i32, i32) {
    %c0_i32 = arith.constant 0 : i32
    %c0_i32_0 = arith.constant 0 : i32
    %c0_i32_1 = arith.constant 0 : i32
    return %c0_i32, %c0_i32_0 : i32, i32
  }
  func.func @transform_2(%arg0: i32) -> (i32, i32) {
    %c0_i32 = arith.constant 0 : i32
    %c0_i32_0 = arith.constant 0 : i32
    %c0_i32_1 = arith.constant 0 : i32
    return %c0_i32, %c0_i32_0 : i32, i32
  }
  func.func @transform_3(%arg0: i32) -> (i32, i32) {
    %c0_i32 = arith.constant 0 : i32
    %c0_i32_0 = arith.constant 0 : i32
    %c0_i32_1 = arith.constant 0 : i32
    return %c0_i32, %c0_i32_0 : i32, i32
  }
  func.func @transform_4(%arg0: i32) -> (i32, i32) {
    %c0_i32 = arith.constant 0 : i32
    %c0_i32_0 = arith.constant 0 : i32
    %c0_i32_1 = arith.constant 0 : i32
    return %c0_i32, %c0_i32_0 : i32, i32
  }
  func.func @transform_5(%arg0: i32) -> (i32, i32) {
    %c0_i32 = arith.constant 0 : i32
    %c0_i32_0 = arith.constant 0 : i32
    %c0_i32_1 = arith.constant 0 : i32
    return %c0_i32, %c0_i32_0 : i32, i32
  }
  func.func @transform_6(%arg0: i32) -> (i32, i32) {
    %c0_i32 = arith.constant 0 : i32
    %c0_i32_0 = arith.constant 0 : i32
    %c0_i32_1 = arith.constant 0 : i32
    return %c0_i32, %c0_i32_0 : i32, i32
  }
  func.func @transform_7(%arg0: i32) -> (i32, i32) {
    %c0_i32 = arith.constant 0 : i32
    %c0_i32_0 = arith.constant 0 : i32
    return %c0_i32, %arg0 : i32, i32
  }
}

</mosaic_0001>

<bundles_post_ra>
// kernel: deep_nn_forward.1
= control target key start
LH: loop header
LB: loop body
LE: loop exit
PB: predicated region body
PF: predicated region fallthrough
CT: control target
= control target key end

     0   :  { %vm54_vm0 = vcmask 261120   ;;  %vm817_vm1 = vmmov 0   ;;  %vm451_vm2 = vcmask 523264   ;;  %s1040_s1 = inlined_call_operand.vmem [shape: f32[32,128], index: 1, kind: input, shape index: {}]   ;;  %s1041_s0 = inlined_call_operand.vmem [shape: f32[128,32], index: 0, kind: input, shape index: {}]   ;;  %s1042_s3 = inlined_call_operand.vmem [shape: f32[128,64], index: 3, kind: input, shape index: {}]   ;;  %s1043_s2 = inlined_call_operand.vmem [shape: f32[1,128], index: 2, kind: input, shape index: {}]   ;;  %s1044_s4 = inlined_call_operand.vmem [shape: f32[1,64], index: 4, kind: input, shape index: {}]   ;;  %s1045_s5 = inlined_call_operand.vmem [shape: f32[1,64], index: 5, kind: input, shape index: {}]   ;;  %s1046_s6 = inlined_call_operand.<no memory space> [shape: f32[1,1], index: 6, kind: input, shape index: {}]   ;;  %s1047_s7 = inlined_call_operand.vmem [shape: f32[1,128], index: 7, kind: output, shape index: {}]  }
   0x1   :  { %v46_v0 = vld [vmem:[%s1040_s1 + $0x18] sm:$0xff]  ;;  %v45_v1 = vld [vmem:[%s1040_s1 + $0x10] sm:$0xff]  ;;  %v27_v2 = vld [vmem:[%s1041_s0] sm:$0xff] }
   0x2   :  { %687 = vmatprep.subr.mxu1 %v46_v0  ;;  %v44_v3 = vld [vmem:[%s1040_s1 + $0x8] sm:$0xff]  ;;  %695 = vmatprep.mubr.msk.f32.mxu1 %vm54_vm0, %v27_v2  ;;  %v43_v4 = vld [vmem:[%s1040_s1] sm:$0xff]  ;;  %v279_v6 = vld [vmem:[%s1042_s3 + $0x78] sm:$0xff] }
   0x3   :  { %688 = vmatpush3.msra.mxu1 %v46_v0  ;;  %v28_v5 = vld [vmem:[%s1041_s0 + $0x8] sm:$0xff]  ;;  %v29_v7 = vld [vmem:[%s1041_s0 + $0x10] sm:$0xff]  ;;  %v30_v9 = vld [vmem:[%s1041_s0 + $0x18] sm:$0xff] }
   0x4   :  { %689 = vmatprep.subr.mxu1 %v45_v1  ;;  %v278_v8 = vld [vmem:[%s1042_s3 + $0x70] sm:$0xff]  ;;  %v277_v10 = vld [vmem:[%s1042_s3 + $0x68] sm:$0xff]  ;;  %v31_v11 = vld [vmem:[%s1041_s0 + $0x20] sm:$0xff] }
   0x5   :  { %690 = vmatpush3.msra.mxu1 %v45_v1  ;;  %v276_v12 = vld [vmem:[%s1042_s3 + $0x60] sm:$0xff]  ;;  %v32_v13 = vld [vmem:[%s1041_s0 + $0x28] sm:$0xff]  ;;  %v275_v14 = vld [vmem:[%s1042_s3 + $0x58] sm:$0xff] }
   0x6   :  { %691 = vmatprep.subr.mxu1 %v44_v3  ;;  %v33_v15 = vld [vmem:[%s1041_s0 + $0x30] sm:$0xff]  ;;  %v34_v17 = vld [vmem:[%s1041_s0 + $0x38] sm:$0xff]  ;;  %v273_v18 = vld [vmem:[%s1042_s3 + $0x48] sm:$0xff] }
   0x7   :  { %692 = vmatpush3.msra.mxu1 %v44_v3  ;;  %v274_v16 = vld [vmem:[%s1042_s3 + $0x50] sm:$0xff]  ;;  %v35_v19 = vld [vmem:[%s1041_s0 + $0x40] sm:$0xff]  ;;  %v36_v21 = vld [vmem:[%s1041_s0 + $0x48] sm:$0xff] }
   0x8   :  { %693 = vmatprep.subr.mxu1 %v43_v4  ;;  %v272_v20 = vld [vmem:[%s1042_s3 + $0x40] sm:$0xff]  ;;  %v271_v22 = vld [vmem:[%s1042_s3 + $0x38] sm:$0xff]  ;;  %v37_v23 = vld [vmem:[%s1041_s0 + $0x50] sm:$0xff] }
   0x9   :  { %694 = vmatpush3.msra.mxu1 %v43_v4  ;;  %v270_v24 = vld [vmem:[%s1042_s3 + $0x30] sm:$0xff]  ;;  %v38_v25 = vld [vmem:[%s1041_s0 + $0x58] sm:$0xff]  ;;  %v269_v26 = vld [vmem:[%s1042_s3 + $0x28] sm:$0xff] }
   0xa   :  { %696 = vmatmul.mubr.msk.f32.vlgmr.msra.gmra.mxu1 %vm54_vm0, %v28_v5  ;;  %719 = vmatprep.subr.mxu1 %v279_v6  ;;  %v39_v27 = vld [vmem:[%s1041_s0 + $0x60] sm:$0xff]  ;;  %v40_v29 = vld [vmem:[%s1041_s0 + $0x68] sm:$0xff]  ;;  %v267_v30 = vld [vmem:[%s1042_s3 + $0x18] sm:$0xff] }
   0xb   :  { %698 = vmatprep.mubr.msk.f32.mxu1 %vm54_vm0, %v29_v7  ;;  %720 = vmatpush3.msra.mxu1 %v279_v6  ;;  %v268_v28 = vld [vmem:[%s1042_s3 + $0x20] sm:$0xff]  ;;  %v41_v31 = vld [vmem:[%s1041_s0 + $0x70] sm:$0xff]  ;;  %v42_v32 = vld [vmem:[%s1041_s0 + $0x78] sm:$0xff] }
   0xc   :  { %721 = vmatprep.subr.mxu1 %v278_v8  ;;  %v266_v33 = vld [vmem:[%s1042_s3 + $0x10] sm:$0xff]  ;;  %v265_v34 = vld [vmem:[%s1042_s3 + $0x8] sm:$0xff]  ;;  %v264_v35 = vld [vmem:[%s1042_s3] sm:$0xff] }
   0xd   :  { %722 = vmatpush3.msra.mxu1 %v278_v8  ;;  %v583_v36 = vld [vmem:[%s1043_s2] ss:$0 sm:$0xff] }
   0xe   :  { %699 = vmatmul.mubr.msk.f32.gmra.mxu1 %vm54_vm0, %v30_v9  ;;  %723 = vmatprep.subr.mxu1 %v277_v10 }
   0xf   :  { %701 = vmatprep.mubr.msk.f32.mxu1 %vm54_vm0, %v31_v11  ;;  %724 = vmatpush3.msra.mxu1 %v277_v10 }
  0x10   :  { %725 = vmatprep.subr.mxu1 %v276_v12 }
  0x11   :  { %726 = vmatpush3.msra.mxu1 %v276_v12 }
  0x12   :  { %702 = vmatmul.mubr.msk.f32.gmra.mxu1 %vm54_vm0, %v32_v13  ;;  %727 = vmatprep.subr.mxu1 %v275_v14 }
  0x13   :  { %704 = vmatprep.mubr.msk.f32.mxu1 %vm54_vm0, %v33_v15  ;;  %728 = vmatpush3.msra.mxu1 %v275_v14 }
  0x14   :  { %729 = vmatprep.subr.mxu1 %v274_v16 }
  0x15   :  { %730 = vmatpush3.msra.mxu1 %v274_v16 }
  0x16   :  { %705 = vmatmul.mubr.msk.f32.gmra.mxu1 %vm54_vm0, %v34_v17  ;;  %731 = vmatprep.subr.mxu1 %v273_v18 }
  0x17   :  { %707 = vmatprep.mubr.msk.f32.mxu1 %vm54_vm0, %v35_v19  ;;  %732 = vmatpush3.msra.mxu1 %v273_v18 }
  0x18   :  { %733 = vmatprep.subr.mxu1 %v272_v20 }
  0x19   :  { %734 = vmatpush3.msra.mxu1 %v272_v20 }
  0x1a   :  { %708 = vmatmul.mubr.msk.f32.gmra.mxu1 %vm54_vm0, %v36_v21  ;;  %735 = vmatprep.subr.mxu1 %v271_v22  ;;  %v816_v21 = vmov 0.0  }
  0x1b   :  { %710 = vmatprep.mubr.msk.f32.mxu1 %vm54_vm0, %v37_v23  ;;  %736 = vmatpush3.msra.mxu1 %v271_v22 }
  0x1c   :  { %737 = vmatprep.subr.mxu1 %v270_v24  ;;  %775 = vmatprep.subr.mxu0 %v816_v21 }
  0x1d   :  { %738 = vmatpush3.msra.mxu1 %v270_v24  ;;  %807 = vmatprep.mubr.msk.f32.mxu0 %vm817_vm1, %v816_v21 }
  0x1e   :  { %711 = vmatmul.mubr.msk.f32.gmra.mxu1 %vm54_vm0, %v38_v25  ;;  %739 = vmatprep.subr.mxu1 %v269_v26 }
  0x1f   :  { %713 = vmatprep.mubr.msk.f32.mxu1 %vm54_vm0, %v39_v27  ;;  %740 = vmatpush3.msra.mxu1 %v269_v26 }
  0x20   :  { %741 = vmatprep.subr.mxu1 %v268_v28 }
  0x21   :  { %742 = vmatpush3.msra.mxu1 %v268_v28 }
  0x22   :  { %714 = vmatmul.mubr.msk.f32.gmra.mxu1 %vm54_vm0, %v40_v29  ;;  %743 = vmatprep.subr.mxu1 %v267_v30 }
  0x23   :  { %716 = vmatprep.mubr.msk.f32.mxu1 %vm54_vm0, %v41_v31  ;;  %744 = vmatpush3.msra.mxu1 %v267_v30 }
  0x24   :  { %745 = vmatprep.subr.mxu1 %v266_v33 }
  0x25   :  { %746 = vmatpush3.msra.mxu1 %v266_v33 }
  0x26   :  { %717 = vmatmul.mubr.msk.f32.gmra.mxu1 %vm54_vm0, %v42_v32  ;;  %747 = vmatprep.subr.mxu1 %v265_v34 }
  0x27   :  { %748 = vmatpush3.msra.mxu1 %v265_v34 }
  0x28   :  { %749 = vmatprep.subr.mxu1 %v264_v35 }
  0x29   :  { %750 = vmatpush3.msra.mxu1 %v264_v35 }
  0xca   :  { %v697_v37 = vpop.f32.mrf.mxu1 }
  0xcb   :  { %v175_v38 = vadd.f32 %v697_v37, %v583_v36 }
  0xcc   :  { %v169_v39 = vpop.f32.mrf.mxu1 }
  0xcd   :  { %v170_v40 = vadd.f32 %v583_v36, %v169_v39  ;;  %v249_v43 = vmax.f32 %v175_v38, 0.0 }
  0xce   :  { %v700_v41 = vpop.f32.mrf.mxu1 }
  0xcf   :  { %v248_v42 = vmax.f32 %v170_v40, 0.0  ;;  %v185_v44 = vadd.f32 %v700_v41, %v583_v36 }
  0xd0   :  { %v179_v45 = vpop.f32.mrf.mxu1 }
  0xd1   :  { %v180_v46 = vadd.f32 %v583_v36, %v179_v45  ;;  %751 = vmatprep.mubr.f32.mxu1 %v248_v42  ;;  %v251_v49 = vmax.f32 %v185_v44, 0.0 }
  0xd2   :  { %v703_v47 = vpop.f32.mrf.mxu1  ;;  %752 = vmatmul.mubr.f32.vlgmr.msra.gmra.mxu1 %v249_v43 }
  0xd3   :  { %v250_v48 = vmax.f32 %v180_v46, 0.0  ;;  %v195_v50 = vadd.f32 %v703_v47, %v583_v36 }
  0xd4   :  { %v189_v51 = vpop.f32.mrf.mxu1 }
  0xd5   :  { %v190_v52 = vadd.f32 %v583_v36, %v189_v51  ;;  %754 = vmatprep.mubr.f32.mxu1 %v250_v48  ;;  %v253_v55 = vmax.f32 %v195_v50, 0.0 }
  0xd6   :  { %v706_v53 = vpop.f32.mrf.mxu1  ;;  %755 = vmatmul.mubr.f32.gmra.mxu1 %v251_v49 }
  0xd7   :  { %v252_v54 = vmax.f32 %v190_v52, 0.0  ;;  %v205_v56 = vadd.f32 %v706_v53, %v583_v36 }
  0xd8   :  { %v199_v57 = vpop.f32.mrf.mxu1 }
  0xd9   :  { %v200_v58 = vadd.f32 %v583_v36, %v199_v57  ;;  %757 = vmatprep.mubr.f32.mxu1 %v252_v54  ;;  %v255_v61 = vmax.f32 %v205_v56, 0.0 }
  0xda   :  { %v709_v59 = vpop.f32.mrf.mxu1  ;;  %758 = vmatmul.mubr.f32.gmra.mxu1 %v253_v55 }
  0xdb   :  { %v254_v60 = vmax.f32 %v200_v58, 0.0  ;;  %v215_v62 = vadd.f32 %v709_v59, %v583_v36 }
  0xdc   :  { %v209_v63 = vpop.f32.mrf.mxu1 }
  0xdd   :  { %v210_v0 = vadd.f32 %v583_v36, %v209_v63  ;;  %760 = vmatprep.mubr.f32.mxu1 %v254_v60  ;;  %v257_v3 = vmax.f32 %v215_v62, 0.0 }
  0xde   :  { %v712_v1 = vpop.f32.mrf.mxu1  ;;  %761 = vmatmul.mubr.f32.gmra.mxu1 %v255_v61 }
  0xdf   :  { %v256_v2 = vmax.f32 %v210_v0, 0.0  ;;  %v225_v4 = vadd.f32 %v712_v1, %v583_v36 }
  0xe0   :  { %v219_v5 = vpop.f32.mrf.mxu1 }
  0xe1   :  { %v220_v6 = vadd.f32 %v583_v36, %v219_v5  ;;  %763 = vmatprep.mubr.f32.mxu1 %v256_v2  ;;  %v259_v9 = vmax.f32 %v225_v4, 0.0 }
  0xe2   :  { %v715_v7 = vpop.f32.mrf.mxu1  ;;  %764 = vmatmul.mubr.f32.gmra.mxu1 %v257_v3 }
  0xe3   :  { %v258_v8 = vmax.f32 %v220_v6, 0.0  ;;  %v235_v10 = vadd.f32 %v715_v7, %v583_v36  ;;  %v448_v7 = vld [vmem:[%s1045_s5] sm:$0x1] }
  0xe4   :  { %v229_v11 = vpop.f32.mrf.mxu1 }
  0xe5   :  { %v230_v12 = vadd.f32 %v583_v36, %v229_v11  ;;  %766 = vmatprep.mubr.f32.mxu1 %v258_v8  ;;  %v261_v15 = vmax.f32 %v235_v10, 0.0  ;;  %v450_v8 = vstv %s1046_s6 }
  0xe6   :  { %v718_v13 = vpop.f32.mrf.mxu1  ;;  %767 = vmatmul.mubr.f32.gmra.mxu1 %v259_v9 }
  0xe7   :  { %v260_v14 = vmax.f32 %v230_v12, 0.0  ;;  %v245_v16 = vadd.f32 %v718_v13, %v583_v36 }
  0xe8   :  { %v239_v17 = vpop.f32.mrf.mxu1 }
  0xe9   :  { %v240_v18 = vadd.f32 %v583_v36, %v239_v17  ;;  %769 = vmatprep.mubr.f32.mxu1 %v260_v14  ;;  %v263_v20 = vmax.f32 %v245_v16, 0.0  ;;  %v600_v36 = vld [vmem:[%s1044_s4] ss:$0 sm:$0xff] }
  0xea   :  { %770 = vmatmul.mubr.f32.gmra.mxu1 %v261_v15 }
  0xeb   :  { %v262_v19 = vmax.f32 %v240_v18, 0.0 }
  0xed   :  { %772 = vmatprep.mubr.f32.mxu1 %v262_v19 }
  0xee   :  { %773 = vmatmul.mubr.f32.gmra.mxu1 %v263_v20 }
 0x192   :  { %v987_v22 = vpop.f32.mrf.mxu1 }
 0x193   :  { %v359_v2 = vadd.f32 %v987_v22, %v600_v36 }
 0x194   :  { %v989_v23 = vpop.f32.mrf.mxu1 }
 0x195   :  { %v433_v4 = vmax.f32 %v359_v2, 0.0  ;;  %v354_v5 = vadd.f32 %v600_v36, %v989_v23 }
 0x196   :  { %v756_v24 = vpop.f32.mrf.mxu1 }
 0x197   :  { %v369_v62 = vadd.f32 %v756_v24, %v600_v36  ;;  %v432_v6 = vmax.f32 %v354_v5, 0.0 }
 0x198   :  { %v991_v25 = vpop.f32.mrf.mxu1 }
 0x199   :  { %v435_v0 = vmax.f32 %v369_v62, 0.0  ;;  %v364_v1 = vadd.f32 %v600_v36, %v991_v25 }
 0x19a   :  { %v759_v26 = vpop.f32.mrf.mxu1 }
 0x19b   :  { %v379_v58 = vadd.f32 %v759_v26, %v600_v36  ;;  %v434_v3 = vmax.f32 %v364_v1, 0.0 }
 0x19c   :  { %v373_v27 = vpop.f32.mrf.mxu1 }
 0x19d   :  { %v437_v60 = vmax.f32 %v379_v58, 0.0  ;;  %v374_v61 = vadd.f32 %v600_v36, %v373_v27 }
 0x19e   :  { %v762_v28 = vpop.f32.mrf.mxu1 }
 0x19f   :  { %v389_v54 = vadd.f32 %v762_v28, %v600_v36  ;;  %v436_v63 = vmax.f32 %v374_v61, 0.0 }
 0x1a0   :  { %v383_v29 = vpop.f32.mrf.mxu1 }
 0x1a1   :  { %v439_v56 = vmax.f32 %v389_v54, 0.0  ;;  %v384_v57 = vadd.f32 %v600_v36, %v383_v29 }
 0x1a2   :  { %v765_v30 = vpop.f32.mrf.mxu1 }
 0x1a3   :  { %v399_v50 = vadd.f32 %v765_v30, %v600_v36  ;;  %v438_v59 = vmax.f32 %v384_v57, 0.0 }
 0x1a4   :  { %v393_v31 = vpop.f32.mrf.mxu1 }
 0x1a5   :  { %v441_v52 = vmax.f32 %v399_v50, 0.0  ;;  %v394_v53 = vadd.f32 %v600_v36, %v393_v31 }
 0x1a6   :  { %v768_v32 = vpop.f32.mrf.mxu1 }
 0x1a7   :  { %v409_v46 = vadd.f32 %v768_v32, %v600_v36  ;;  %v440_v55 = vmax.f32 %v394_v53, 0.0 }
 0x1a8   :  { %v403_v33 = vpop.f32.mrf.mxu1 }
 0x1a9   :  { %v443_v48 = vmax.f32 %v409_v46, 0.0  ;;  %v404_v49 = vadd.f32 %v600_v36, %v403_v33 }
 0x1aa   :  { %v771_v34 = vpop.f32.mrf.mxu1 }
 0x1ab   :  { %v419_v42 = vadd.f32 %v771_v34, %v600_v36  ;;  %v442_v51 = vmax.f32 %v404_v49, 0.0 }
 0x1ac   :  { %v413_v35 = vpop.f32.mrf.mxu1 }
 0x1ad   :  { %v445_v44 = vmax.f32 %v419_v42, 0.0  ;;  %v414_v45 = vadd.f32 %v600_v36, %v413_v35 }
 0x1ae   :  { %v774_v37 = vpop.f32.mrf.mxu1 }
 0x1af   :  { %v429_v38 = vadd.f32 %v774_v37, %v600_v36  ;;  %v444_v47 = vmax.f32 %v414_v45, 0.0 }
 0x1b0   :  { %v423_v39 = vpop.f32.mrf.mxu1 }
 0x1b1   :  { %v447_v40 = vmax.f32 %v429_v38, 0.0  ;;  %v424_v41 = vadd.f32 %v600_v36, %v423_v39 }
 0x1b3   :  { %776 = vmatpush3.xpose.msk.msra.mxu0 %vm451_vm2, %v447_v40  ;;  %v446_v43 = vmax.f32 %v424_v41, 0.0 }
 0x1b4   :  { %777 = vmatprep.subr.mxu0 %v816_v21 }
 0x1b7   :  { %778 = vmatpush3.xpose.msk.msra.mxu0 %vm451_vm2, %v446_v43 }
 0x1b8   :  { %779 = vmatprep.subr.mxu0 %v816_v21 }
 0x1bb   :  { %780 = vmatpush3.xpose.msk.msra.mxu0 %vm451_vm2, %v445_v44 }
 0x1bc   :  { %781 = vmatprep.subr.mxu0 %v816_v21 }
 0x1bf   :  { %782 = vmatpush3.xpose.msk.msra.mxu0 %vm451_vm2, %v444_v47 }
 0x1c0   :  { %783 = vmatprep.subr.mxu0 %v816_v21 }
 0x1c3   :  { %784 = vmatpush3.xpose.msk.msra.mxu0 %vm451_vm2, %v443_v48 }
 0x1c4   :  { %785 = vmatprep.subr.mxu0 %v816_v21 }
 0x1c7   :  { %786 = vmatpush3.xpose.msk.msra.mxu0 %vm451_vm2, %v442_v51 }
 0x1c8   :  { %787 = vmatprep.subr.mxu0 %v816_v21 }
 0x1cb   :  { %788 = vmatpush3.xpose.msk.msra.mxu0 %vm451_vm2, %v441_v52 }
 0x1cc   :  { %789 = vmatprep.subr.mxu0 %v816_v21 }
 0x1cf   :  { %790 = vmatpush3.xpose.msk.msra.mxu0 %vm451_vm2, %v440_v55 }
 0x1d0   :  { %791 = vmatprep.subr.mxu0 %v816_v21 }
 0x1d3   :  { %792 = vmatpush3.xpose.msk.msra.mxu0 %vm451_vm2, %v439_v56 }
 0x1d4   :  { %793 = vmatprep.subr.mxu0 %v816_v21 }
 0x1d7   :  { %794 = vmatpush3.xpose.msk.msra.mxu0 %vm451_vm2, %v438_v59 }
 0x1d8   :  { %795 = vmatprep.subr.mxu0 %v816_v21 }
 0x1db   :  { %796 = vmatpush3.xpose.msk.msra.mxu0 %vm451_vm2, %v437_v60 }
 0x1dc   :  { %797 = vmatprep.subr.mxu0 %v816_v21 }
 0x1df   :  { %798 = vmatpush3.xpose.msk.msra.mxu0 %vm451_vm2, %v436_v63 }
 0x1e0   :  { %799 = vmatprep.subr.mxu0 %v816_v21 }
 0x1e3   :  { %800 = vmatpush3.xpose.msk.msra.mxu0 %vm451_vm2, %v435_v0 }
 0x1e4   :  { %801 = vmatprep.subr.mxu0 %v816_v21 }
 0x1e7   :  { %802 = vmatpush3.xpose.msk.msra.mxu0 %vm451_vm2, %v434_v3 }
 0x1e8   :  { %803 = vmatprep.subr.mxu0 %v816_v21 }
 0x1eb   :  { %804 = vmatpush3.xpose.msk.msra.mxu0 %vm451_vm2, %v433_v4 }
 0x1ec   :  { %805 = vmatprep.subr.mxu0 %v816_v21 }
 0x1ef   :  { %806 = vmatpush3.xpose.msk.msra.mxu0 %vm451_vm2, %v432_v6 }
 0x1f2   :  { %808 = vmatmul.mubr.msk.f32.vlgmr.msra.gmra.mxu0 %vm451_vm2, %v448_v7 }
 0x2b2   :  { %v569_v9 = vpop.f32.mrf.mxu0 }
 0x2b3   :  { %v570_v10 = vadd.f32 %v569_v9, %v450_v8 }
 0x2b4   :  { %v809_v11 = vpop.f32.mrf.mxu0 }
 0x2b5   :  { %v573_v12 = vsub.f32 0.0, %v570_v10 }
 0x2b7   :  { %v574_v13 = vmul.f32 1.442695, %v573_v12 }
 0x2b9   :  { %812 = vpow2.f32 %v574_v13 }
 0x2c6   :  { %v813_v14 = vpop.eup %812 }
 0x2c7   :  { %v576_v15 = vadd.f32 1.0, %v813_v14 }
 0x2c9   :  { %814 = vrcp.f32 %v576_v15 }
 0x2d6   :  { %v815_v16 = vpop.eup %814 }
 0x2d7   :  { %578 = vst [vmem:[%s1047_s7] sm:$0x1] %v815_v16 }

</bundles_post_ra>
